<compile_context>
chip_gen: v6e
topology: v6e:2x2x1
jax: 0.10.0
libtpu: 0.0.40
codegen_flags: <defaults>
</compile_context>

<pallas_src>
import functools
import math

import jax
import jax.numpy as jnp
from jax.experimental import pallas as pl
from jax.experimental.pallas import tpu as pltpu


def _transformer_block_kernel(x_ref,
                              wqkv_ref, bqkv_ref,
                              wo3_ref, bo_ref,
                              w1_ref, b1_ref,
                              w2_ref, b2_ref,
                              o_ref,
                              *, num_heads, head_dim):
    """One grid step = one batch element. x_ref/o_ref: (L, E)."""
    H, Dh = num_heads, head_dim
    x = x_ref[...]                                            # (L, E) f32
    scale = 1.0 / math.sqrt(Dh)

    # --- fused QKV in_proj: one MXU pass -> (L, 3E) ---
    qkv = jnp.dot(x, wqkv_ref[...],
                  preferred_element_type=jnp.float32) + bqkv_ref[...]

    # Head-batched operands: qkv columns are [q_h0..q_hH-1 | k_h0.. | v_h0..]
    # (head-contiguous within q/k/v), so one stack gives (3H, L, Dh) and q/k/v are
    # cheap leading-dim slices of it (no per-tensor stack/concat churn).
    groups = jnp.stack(
        [qkv[:, g * Dh:(g + 1) * Dh] for g in range(3 * H)], axis=0)  # (3H, L, Dh)
    q = groups[:H] * scale                                    # (H, L, Dh)
    k = groups[H:2 * H]                                       # (H, L, Dh)
    v = groups[2 * H:]                                        # (H, L, Dh)

    # --- attention, batched over heads (single leading batch dim) ---
    s = jnp.einsum('hqd,hkd->hqk', q, k,
                   preferred_element_type=jnp.float32)        # (H, L, L)
    s = s - jnp.max(s, axis=-1, keepdims=True)
    p = jnp.exp(s)
    p = p / jnp.sum(p, axis=-1, keepdims=True)                # exact softmax divide
    ctx = jnp.einsum('hqk,hkd->hqd', p, v,
                     preferred_element_type=jnp.float32)      # (H, L, Dh)

    # --- head merge + out_proj without a lane concatenate ---
    # concat_h(ctx_h) @ Wo  ==  sum_h ctx_h @ Wo[h*Dh:(h+1)*Dh, :]
    attn = jnp.einsum('hqd,hde->hqe', ctx, wo3_ref[...],
                      preferred_element_type=jnp.float32)     # (H, L, E)
    attn = jnp.sum(attn, axis=0) + bo_ref[...]                # (L, E)

    # dropout (identity, eval semantics); literal `x = x + x` from the reference
    x2 = attn + attn

    # --- feed-forward ---
    h1 = jnp.dot(x2, w1_ref[...], preferred_element_type=jnp.float32) + b1_ref[...]
    h1 = jnp.where(h1 >= 0.0, h1, 0.01 * h1)                  # leaky_relu, slope 0.01
    # dropout (identity in eval)
    ff = jnp.dot(h1, w2_ref[...], preferred_element_type=jnp.float32) + b2_ref[...]

    o_ref[...] = (x2 + ff).astype(o_ref.dtype)


def transformer_block(x, params, *, num_heads):
    """x: (L, N, E) float32 (seq, batch, embed) — same layout as nn.MultiheadAttention."""
    L, N, E = x.shape
    assert E % num_heads == 0
    head_dim = E // num_heads

    # Batch-outer fold: (L, N, E) -> (N, L, E) -> (N*L, E).  The tiny wrapper
    # transpose makes per-batch attention block-diagonal (no mask in the kernel).
    xb = jnp.transpose(x, (1, 0, 2)).reshape(N * L, E)
    # out_proj weight pre-reshaped per head: (E, E) -> (H, Dh, E)  (free, done by XLA).
    wo3 = params["wo"].reshape(num_heads, head_dim, E)

    kernel = functools.partial(_transformer_block_kernel,
                               num_heads=num_heads, head_dim=head_dim)

    const2 = lambda n: (0, 0)          # weight blocks: same block every step -> resident
    const3 = lambda n: (0, 0, 0)

    y = pl.pallas_call(
        kernel,
        out_shape=jax.ShapeDtypeStruct((N * L, E), x.dtype),
        grid_spec=pltpu.PrefetchScalarGridSpec(
            num_scalar_prefetch=0,
            grid=(N,),
            in_specs=[
                pl.BlockSpec((L, E), lambda n: (n, 0)),              # x: one batch slice/step
                pl.BlockSpec((E, 3 * E), const2),                    # w_qkv (resident)
                pl.BlockSpec((1, 3 * E), const2),                    # b_qkv
                pl.BlockSpec((num_heads, head_dim, E), const3),      # wo (H, Dh, E)
                pl.BlockSpec((1, E), const2),                        # bo
                pl.BlockSpec((E, E), const2),                        # w1
                pl.BlockSpec((1, E), const2),                        # b1
                pl.BlockSpec((E, E), const2),                        # w2
                pl.BlockSpec((1, E), const2),                        # b2
            ],
            out_specs=pl.BlockSpec((L, E), lambda n: (n, 0)),
        ),
        compiler_params=pltpu.CompilerParams(
            dimension_semantics=("parallel",)),                      # megacore on v7x
    )(xb,
      params["w_qkv"], params["b_qkv"],
      wo3, params["bo"],
      params["w1"], params["b1"],
      params["w2"], params["b2"])

    return y.reshape(N, L, E).transpose(1, 0, 2)


def transformer_block_ref(x, params, *, num_heads):
    """Pure-JAX reference (independent formulation) for correctness checking."""
    L, N, E = x.shape
    dh = E // num_heads
    x2d = x.reshape(L * N, E)
    qkv = x2d @ params["w_qkv"] + params["b_qkv"]

    def split(m):
        return m.reshape(L, N, num_heads, dh)

    q, k, v = split(qkv[:, :E]), split(qkv[:, E:2 * E]), split(qkv[:, 2 * E:])
    s = jnp.einsum('lnhd,mnhd->nhlm', q, k) / math.sqrt(dh)
    p = jax.nn.softmax(s, axis=-1)
    ctx = jnp.einsum('nhlm,mnhd->lnhd', p, v).reshape(L * N, E)
    attn = ctx @ params["wo"] + params["bo"]
    x2 = attn + attn
    h1 = x2 @ params["w1"] + params["b1"]
    h1 = jnp.where(h1 >= 0.0, h1, 0.01 * h1)
    ff = h1 @ params["w2"] + params["b2"]
    return (x2 + ff).reshape(L, N, E)


def init_params(key, ff_dim):
    """Deterministic synthetic params for nn.MultiheadAttention(E, H) + two nn.Linear(E, E).
    Weights stored pre-transposed (x @ W); QKV fused into a single (E, 3E) matrix whose
    columns are [q | k | v], head-contiguous inside each of q/k/v (PyTorch in_proj layout)."""
    E = ff_dim
    ks = jax.random.split(key, 8)
    s = 1.0 / math.sqrt(E)

    def u(k, shape):
        return jax.random.uniform(k, shape, jnp.float32, -s, s)

    return {
        "w_qkv": u(ks[0], (E, 3 * E)), "b_qkv": u(ks[1], (1, 3 * E)),
        "wo": u(ks[2], (E, E)), "bo": u(ks[3], (1, E)),
        "w1": u(ks[4], (E, E)), "b1": u(ks[5], (1, E)),
        "w2": u(ks[6], (E, E)), "b2": u(ks[7], (1, E)),
    }


if __name__ == "__main__":
    # Small shapes consistent with the module: seq=8, batch=2, ff_dim=32, heads=4.
    L, N, E, H = 8, 2, 32, 4

    key = jax.random.PRNGKey(0)
    k_x, k_p = jax.random.split(key)
    x = jax.random.normal(k_x, (L, N, E), dtype=jnp.float32)
    params = init_params(k_p, E)

    out = transformer_block(x, params, num_heads=H)
    out = jax.block_until_ready(out)

    assert out.shape == (L, N, E), out.shape
    assert bool(jnp.all(jnp.isfinite(out)))

    ref = transformer_block_ref(x, params, num_heads=H)
    max_err = float(jnp.max(jnp.abs(out - ref)))
    assert max_err < 1e-4, f"max abs err {max_err}"   # exact softmax; only f32 reassociation noise

    print("KERNEL_OK")
</pallas_src>

<mosaic_0001>
module attributes {stable_mosaic.version = 11 : i64} {
  func.func @_transformer_block_kernel(%arg0: i32, %arg1: memref<8x32xf32, #tpu.memory_space<vmem>>, %arg2: memref<32x96xf32, #tpu.memory_space<vmem>>, %arg3: memref<1x96xf32, #tpu.memory_space<vmem>>, %arg4: memref<4x8x32xf32, #tpu.memory_space<vmem>>, %arg5: memref<1x32xf32, #tpu.memory_space<vmem>>, %arg6: memref<32x32xf32, #tpu.memory_space<vmem>>, %arg7: memref<1x32xf32, #tpu.memory_space<vmem>>, %arg8: memref<32x32xf32, #tpu.memory_space<vmem>>, %arg9: memref<1x32xf32, #tpu.memory_space<vmem>>, %arg10: memref<8x32xf32, #tpu.memory_space<vmem>>) attributes {dimension_semantics = [#tpu.dimension_semantics<parallel>], iteration_bounds = array<i64: 2>, scalar_prefetch = 0 : i64, scratch_operands = 0 : i64, tpu.core_type = #tpu.core_type<tc>, window_params = [{transform_indices = @transform_0, window_bounds = array<i64: 8, 32>}, {pipeline_mode = #tpu.pipeline_mode<synchronous>, transform_indices = @transform_1, window_bounds = array<i64: 32, 96>}, {pipeline_mode = #tpu.pipeline_mode<synchronous>, transform_indices = @transform_2, window_bounds = array<i64: 1, 96>}, {pipeline_mode = #tpu.pipeline_mode<synchronous>, transform_indices = @transform_3, window_bounds = array<i64: 4, 8, 32>}, {pipeline_mode = #tpu.pipeline_mode<synchronous>, transform_indices = @transform_4, window_bounds = array<i64: 1, 32>}, {pipeline_mode = #tpu.pipeline_mode<synchronous>, transform_indices = @transform_5, window_bounds = array<i64: 32, 32>}, {pipeline_mode = #tpu.pipeline_mode<synchronous>, transform_indices = @transform_6, window_bounds = array<i64: 1, 32>}, {pipeline_mode = #tpu.pipeline_mode<synchronous>, transform_indices = @transform_7, window_bounds = array<i64: 32, 32>}, {pipeline_mode = #tpu.pipeline_mode<synchronous>, transform_indices = @transform_8, window_bounds = array<i64: 1, 32>}, {transform_indices = @transform_9, window_bounds = array<i64: 8, 32>}]} {
    %c0 = arith.constant 0 : index
    %c0_0 = arith.constant 0 : index
    %0 = vector.load %arg1[%c0, %c0_0] : memref<8x32xf32, #tpu.memory_space<vmem>>, vector<8x32xf32>
    %c0_1 = arith.constant 0 : index
    %c0_2 = arith.constant 0 : index
    %1 = vector.load %arg2[%c0_1, %c0_2] : memref<32x96xf32, #tpu.memory_space<vmem>>, vector<32x96xf32>
    %cst = arith.constant dense<0.000000e+00> : vector<8x96xf32>
    %2 = tpu.matmul %0, %1, %cst {dimension_numbers = #tpu.dot_dimension_numbers<[1], [0], [0], [1], [0, 0, 1, 1], [], []>} : vector<8x32xf32>, vector<32x96xf32>, vector<8x96xf32> -> vector<8x96xf32>
    %c0_3 = arith.constant 0 : index
    %c0_4 = arith.constant 0 : index
    %3 = vector.load %arg3[%c0_3, %c0_4] : memref<1x96xf32, #tpu.memory_space<vmem>>, vector<1x96xf32>
    %4 = vector.broadcast %3 : vector<1x96xf32> to vector<8x96xf32>
    %5 = arith.addf %2, %4 : vector<8x96xf32>
    %6 = vector.extract_strided_slice %5 {offsets = [0, 0], sizes = [8, 8], strides = [1, 1]} : vector<8x96xf32> to vector<8x8xf32>
    %7 = vector.extract_strided_slice %5 {offsets = [0, 8], sizes = [8, 8], strides = [1, 1]} : vector<8x96xf32> to vector<8x8xf32>
    %8 = vector.extract_strided_slice %5 {offsets = [0, 16], sizes = [8, 8], strides = [1, 1]} : vector<8x96xf32> to vector<8x8xf32>
    %9 = vector.extract_strided_slice %5 {offsets = [0, 24], sizes = [8, 8], strides = [1, 1]} : vector<8x96xf32> to vector<8x8xf32>
    %10 = vector.extract_strided_slice %5 {offsets = [0, 32], sizes = [8, 8], strides = [1, 1]} : vector<8x96xf32> to vector<8x8xf32>
    %11 = vector.extract_strided_slice %5 {offsets = [0, 40], sizes = [8, 8], strides = [1, 1]} : vector<8x96xf32> to vector<8x8xf32>
    %12 = vector.extract_strided_slice %5 {offsets = [0, 48], sizes = [8, 8], strides = [1, 1]} : vector<8x96xf32> to vector<8x8xf32>
    %13 = vector.extract_strided_slice %5 {offsets = [0, 56], sizes = [8, 8], strides = [1, 1]} : vector<8x96xf32> to vector<8x8xf32>
    %14 = vector.extract_strided_slice %5 {offsets = [0, 64], sizes = [8, 8], strides = [1, 1]} : vector<8x96xf32> to vector<8x8xf32>
    %15 = vector.extract_strided_slice %5 {offsets = [0, 72], sizes = [8, 8], strides = [1, 1]} : vector<8x96xf32> to vector<8x8xf32>
    %16 = vector.extract_strided_slice %5 {offsets = [0, 80], sizes = [8, 8], strides = [1, 1]} : vector<8x96xf32> to vector<8x8xf32>
    %17 = vector.extract_strided_slice %5 {offsets = [0, 88], sizes = [8, 8], strides = [1, 1]} : vector<8x96xf32> to vector<8x8xf32>
    %18 = vector.shape_cast %6 : vector<8x8xf32> to vector<1x8x8xf32>
    %19 = vector.shape_cast %7 : vector<8x8xf32> to vector<1x8x8xf32>
    %20 = vector.shape_cast %8 : vector<8x8xf32> to vector<1x8x8xf32>
    %21 = vector.shape_cast %9 : vector<8x8xf32> to vector<1x8x8xf32>
    %22 = vector.shape_cast %10 : vector<8x8xf32> to vector<1x8x8xf32>
    %23 = vector.shape_cast %11 : vector<8x8xf32> to vector<1x8x8xf32>
    %24 = vector.shape_cast %12 : vector<8x8xf32> to vector<1x8x8xf32>
    %25 = vector.shape_cast %13 : vector<8x8xf32> to vector<1x8x8xf32>
    %26 = vector.shape_cast %14 : vector<8x8xf32> to vector<1x8x8xf32>
    %27 = vector.shape_cast %15 : vector<8x8xf32> to vector<1x8x8xf32>
    %28 = vector.shape_cast %16 : vector<8x8xf32> to vector<1x8x8xf32>
    %29 = vector.shape_cast %17 : vector<8x8xf32> to vector<1x8x8xf32>
    %30 = tpu.concatenate %18, %19, %20, %21, %22, %23, %24, %25, %26, %27, %28, %29 in 0 : vector<1x8x8xf32>, vector<1x8x8xf32>, vector<1x8x8xf32>, vector<1x8x8xf32>, vector<1x8x8xf32>, vector<1x8x8xf32>, vector<1x8x8xf32>, vector<1x8x8xf32>, vector<1x8x8xf32>, vector<1x8x8xf32>, vector<1x8x8xf32>, vector<1x8x8xf32> -> vector<12x8x8xf32>
    %31 = vector.extract_strided_slice %30 {offsets = [0, 0, 0], sizes = [4, 8, 8], strides = [1, 1, 1]} : vector<12x8x8xf32> to vector<4x8x8xf32>
    %cst_5 = arith.constant 0.353553385 : f32
    %32 = vector.broadcast %cst_5 : f32 to vector<4x8x8xf32>
    %33 = arith.mulf %31, %32 : vector<4x8x8xf32>
    %34 = vector.extract_strided_slice %30 {offsets = [4, 0, 0], sizes = [4, 8, 8], strides = [1, 1, 1]} : vector<12x8x8xf32> to vector<4x8x8xf32>
    %35 = vector.extract_strided_slice %30 {offsets = [8, 0, 0], sizes = [4, 8, 8], strides = [1, 1, 1]} : vector<12x8x8xf32> to vector<4x8x8xf32>
    "tpu.trace_start"() <{level = 10 : i32, message = "hqd,hkd->hqk"}> : () -> ()
    %cst_6 = arith.constant dense<0.000000e+00> : vector<4x8x8xf32>
    %36 = tpu.matmul %33, %34, %cst_6 {dimension_numbers = #tpu.dot_dimension_numbers<[2], [2], [1], [1], [0, 0, 0, 1, 1, 1], [0], [0]>} : vector<4x8x8xf32>, vector<4x8x8xf32>, vector<4x8x8xf32> -> vector<4x8x8xf32>
    "tpu.trace_stop"() : () -> ()
    %cst_7 = arith.constant dense<0xFF800000> : vector<4x8xf32>
    %37 = vector.multi_reduction <maximumf>, %36, %cst_7 [2] : vector<4x8x8xf32> to vector<4x8xf32>
    %38 = vector.shape_cast %37 : vector<4x8xf32> to vector<4x8x1xf32>
    %39 = vector.broadcast %38 : vector<4x8x1xf32> to vector<4x8x8xf32>
    %40 = arith.subf %36, %39 : vector<4x8x8xf32>
    %41 = math.exp %40 : vector<4x8x8xf32>
    %cst_8 = arith.constant dense<0.000000e+00> : vector<4x8xf32>
    %42 = vector.multi_reduction <add>, %41, %cst_8 [2] : vector<4x8x8xf32> to vector<4x8xf32>
    %43 = vector.shape_cast %42 : vector<4x8xf32> to vector<4x8x1xf32>
    %44 = vector.broadcast %43 : vector<4x8x1xf32> to vector<4x8x8xf32>
    %45 = arith.divf %41, %44 : vector<4x8x8xf32>
    "tpu.trace_start"() <{level = 10 : i32, message = "hqk,hkd->hqd"}> : () -> ()
    %cst_9 = arith.constant dense<0.000000e+00> : vector<4x8x8xf32>
    %46 = tpu.matmul %45, %35, %cst_9 {dimension_numbers = #tpu.dot_dimension_numbers<[2], [1], [1], [2], [0, 0, 0, 1, 1, 2], [0], [0]>} : vector<4x8x8xf32>, vector<4x8x8xf32>, vector<4x8x8xf32> -> vector<4x8x8xf32>
    "tpu.trace_stop"() : () -> ()
    %c0_10 = arith.constant 0 : index
    %c0_11 = arith.constant 0 : index
    %c0_12 = arith.constant 0 : index
    %47 = vector.load %arg4[%c0_10, %c0_11, %c0_12] : memref<4x8x32xf32, #tpu.memory_space<vmem>>, vector<4x8x32xf32>
    "tpu.trace_start"() <{level = 10 : i32, message = "hqd,hde->hqe"}> : () -> ()
    %cst_13 = arith.constant dense<0.000000e+00> : vector<4x8x32xf32>
    %48 = tpu.matmul %46, %47, %cst_13 {dimension_numbers = #tpu.dot_dimension_numbers<[2], [1], [1], [2], [0, 0, 0, 1, 1, 2], [0], [0]>} : vector<4x8x8xf32>, vector<4x8x32xf32>, vector<4x8x32xf32> -> vector<4x8x32xf32>
    "tpu.trace_stop"() : () -> ()
    %cst_14 = arith.constant dense<0.000000e+00> : vector<8x32xf32>
    %49 = vector.multi_reduction <add>, %48, %cst_14 [0] : vector<4x8x32xf32> to vector<8x32xf32>
    %c0_15 = arith.constant 0 : index
    %c0_16 = arith.constant 0 : index
    %50 = vector.load %arg5[%c0_15, %c0_16] : memref<1x32xf32, #tpu.memory_space<vmem>>, vector<1x32xf32>
    %51 = vector.broadcast %50 : vector<1x32xf32> to vector<8x32xf32>
    %52 = arith.addf %49, %51 : vector<8x32xf32>
    %53 = arith.addf %52, %52 : vector<8x32xf32>
    %c0_17 = arith.constant 0 : index
    %c0_18 = arith.constant 0 : index
    %54 = vector.load %arg6[%c0_17, %c0_18] : memref<32x32xf32, #tpu.memory_space<vmem>>, vector<32x32xf32>
    %cst_19 = arith.constant dense<0.000000e+00> : vector<8x32xf32>
    %55 = tpu.matmul %53, %54, %cst_19 {dimension_numbers = #tpu.dot_dimension_numbers<[1], [0], [0], [1], [0, 0, 1, 1], [], []>} : vector<8x32xf32>, vector<32x32xf32>, vector<8x32xf32> -> vector<8x32xf32>
    %c0_20 = arith.constant 0 : index
    %c0_21 = arith.constant 0 : index
    %56 = vector.load %arg7[%c0_20, %c0_21] : memref<1x32xf32, #tpu.memory_space<vmem>>, vector<1x32xf32>
    %57 = vector.broadcast %56 : vector<1x32xf32> to vector<8x32xf32>
    %58 = arith.addf %55, %57 : vector<8x32xf32>
    %cst_22 = arith.constant 0.000000e+00 : f32
    %59 = vector.broadcast %cst_22 : f32 to vector<8x32xf32>
    %60 = arith.cmpf oge, %58, %59 : vector<8x32xf32>
    %cst_23 = arith.constant 0.00999999977 : f32
    %61 = vector.broadcast %cst_23 : f32 to vector<8x32xf32>
    %62 = arith.mulf %61, %58 : vector<8x32xf32>
    %63 = arith.select %60, %58, %62 : vector<8x32xi1>, vector<8x32xf32>
    %c0_24 = arith.constant 0 : index
    %c0_25 = arith.constant 0 : index
    %64 = vector.load %arg8[%c0_24, %c0_25] : memref<32x32xf32, #tpu.memory_space<vmem>>, vector<32x32xf32>
    %cst_26 = arith.constant dense<0.000000e+00> : vector<8x32xf32>
    %65 = tpu.matmul %63, %64, %cst_26 {dimension_numbers = #tpu.dot_dimension_numbers<[1], [0], [0], [1], [0, 0, 1, 1], [], []>} : vector<8x32xf32>, vector<32x32xf32>, vector<8x32xf32> -> vector<8x32xf32>
    %c0_27 = arith.constant 0 : index
    %c0_28 = arith.constant 0 : index
    %66 = vector.load %arg9[%c0_27, %c0_28] : memref<1x32xf32, #tpu.memory_space<vmem>>, vector<1x32xf32>
    %67 = vector.broadcast %66 : vector<1x32xf32> to vector<8x32xf32>
    %68 = arith.addf %65, %67 : vector<8x32xf32>
    %69 = arith.addf %53, %68 : vector<8x32xf32>
    %c0_29 = arith.constant 0 : index
    %c0_30 = arith.constant 0 : index
    %70 = vector.load %arg10[%c0_29, %c0_30] : memref<8x32xf32, #tpu.memory_space<vmem>>, vector<8x32xf32>
    tpu.vector_store %arg10[%c0_29, %c0_30], %69 {strides = array<i32>} : memref<8x32xf32, #tpu.memory_space<vmem>>, vector<8x32xf32>,
    return
  }
  func.func @transform_0(%arg0: i32) -> (i32, i32) {
    %c0_i32 = arith.constant 0 : i32
    %c0_i32_0 = arith.constant 0 : i32
    return %arg0, %c0_i32 : i32, i32
  }
  func.func @transform_1(%arg0: i32) -> (i32, i32) {
    %c0_i32 = arith.constant 0 : i32
    %c0_i32_0 = arith.constant 0 : i32
    %c0_i32_1 = arith.constant 0 : i32
    return %c0_i32, %c0_i32_0 : i32, i32
  }
  func.func @transform_2(%arg0: i32) -> (i32, i32) {
    %c0_i32 = arith.constant 0 : i32
    %c0_i32_0 = arith.constant 0 : i32
    %c0_i32_1 = arith.constant 0 : i32
    return %c0_i32, %c0_i32_0 : i32, i32
  }
  func.func @transform_3(%arg0: i32) -> (i32, i32, i32) {
    %c0_i32 = arith.constant 0 : i32
    %c0_i32_0 = arith.constant 0 : i32
    %c0_i32_1 = arith.constant 0 : i32
    %c0_i32_2 = arith.constant 0 : i32
    return %c0_i32, %c0_i32_0, %c0_i32_1 : i32, i32, i32
  }
  func.func @transform_4(%arg0: i32) -> (i32, i32) {
    %c0_i32 = arith.constant 0 : i32
    %c0_i32_0 = arith.constant 0 : i32
    %c0_i32_1 = arith.constant 0 : i32
    return %c0_i32, %c0_i32_0 : i32, i32
  }
  func.func @transform_5(%arg0: i32) -> (i32, i32) {
    %c0_i32 = arith.constant 0 : i32
    %c0_i32_0 = arith.constant 0 : i32
    %c0_i32_1 = arith.constant 0 : i32
    return %c0_i32, %c0_i32_0 : i32, i32
  }
  func.func @transform_6(%arg0: i32) -> (i32, i32) {
    %c0_i32 = arith.constant 0 : i32
    %c0_i32_0 = arith.constant 0 : i32
    %c0_i32_1 = arith.constant 0 : i32
    return %c0_i32, %c0_i32_0 : i32, i32
  }
  func.func @transform_7(%arg0: i32) -> (i32, i32) {
    %c0_i32 = arith.constant 0 : i32
    %c0_i32_0 = arith.constant 0 : i32
    %c0_i32_1 = arith.constant 0 : i32
    return %c0_i32, %c0_i32_0 : i32, i32
  }
  func.func @transform_8(%arg0: i32) -> (i32, i32) {
    %c0_i32 = arith.constant 0 : i32
    %c0_i32_0 = arith.constant 0 : i32
    %c0_i32_1 = arith.constant 0 : i32
    return %c0_i32, %c0_i32_0 : i32, i32
  }
  func.func @transform_9(%arg0: i32) -> (i32, i32) {
    %c0_i32 = arith.constant 0 : i32
    %c0_i32_0 = arith.constant 0 : i32
    return %arg0, %c0_i32 : i32, i32
  }
}

</mosaic_0001>

<bundles_post_ra>
// kernel: tpu_custom_call.1
= control target key start
LH: loop header
LB: loop body
LE: loop exit
PB: predicated region body
PF: predicated region fallthrough
CT: control target
= control target key end

     0   :  { %s2671_s0 = inlined_call_operand.hbm [shape: f32[16,32], index: 0, kind: input, shape index: {}]   ;;  %s2672_s1 = inlined_call_operand.hbm [shape: f32[32,96], index: 1, kind: input, shape index: {}]   ;;  %s2673_s2 = inlined_call_operand.vmem [shape: f32[1,96], index: 2, kind: input, shape index: {}]   ;;  %s2674_s3 = inlined_call_operand.hbm [shape: f32[4,8,32], index: 3, kind: input, shape index: {}]   ;;  %s2675_s4 = inlined_call_operand.vmem [shape: f32[1,32], index: 4, kind: input, shape index: {}]   ;;  %s2676_s5 = inlined_call_operand.hbm [shape: f32[32,32], index: 5, kind: input, shape index: {}]   ;;  %s2677_s6 = inlined_call_operand.vmem [shape: f32[1,32], index: 6, kind: input, shape index: {}]   ;;  %s2678_s7 = inlined_call_operand.hbm [shape: f32[32,32], index: 7, kind: input, shape index: {}]   ;;  %s2679_s8 = inlined_call_operand.vmem [shape: f32[1,32], index: 8, kind: input, shape index: {}]   ;;  %s2680_s9 = inlined_call_operand.hbm [shape: f32[16,32], index: 9, kind: output, shape index: {}]  }
   0x1   :  { %2685 = sst [smem:[#allocation16_spill]] %s2672_s1 }
   0x2   :  { %2686 = sst [smem:[#allocation17_spill]] %s2674_s3 }
   0x3   :  { %2687 = sst [smem:[#allocation18_spill]] %s2676_s5 }
   0x4   :  { %2688 = sst [smem:[#allocation19_spill]] %s2678_s7 }
   0x5   :  { %14 = vsyncpa [#allocation3], 0 }
   0x6   :  { %16 = vsyncpa [#allocation3 + $0x1], 0 }
   0x7   :  { %17 = vsyncpa [#allocation6], 0 }
   0x8   :  { %18 = vsyncpa [#allocation9], 0 }
   0x9   :  { %19 = vsyncpa [#allocation4], 0 }
   0xa   :  { %21 = vsyncpa [#allocation4 + $0x1], 0  ;;  %s2340_s30 = smov 0   ;;  %s2342_s10 = smov 0  }
   0xb   :  { %s2344_s11 = smov 0   ;;  %s2346_s12 = smov 0  }
   0xc LB: > { %s2269_s13 = smov [#allocation5]   ;;  %s2361_s15 = sadd.s32 4294967295, %s2267_s12   ;;  %s2267_s12 = sphi %s2346_s12, %s2712_s12   ;;  %s2263_s11 = sphi %s2344_s11, %s2711_s11   ;;  %s2259_s10 = sphi %s2342_s10, %s2710_s10   ;;  %s2255_s30 = sphi %s2340_s30, %s2709_s30  }
   0xd   : > { %s264_s14 = sshll.u32 %s2269_s13, 4  ;;  %p1771_p0 = scmp.ge.s32.totalorder %s2267_s12, 1  ;;  %s265_s14 = int_to_ptr.vmem [resolvable:$true] %s264_s14 }
   0xe   : > { %p2681_p1 = scmp.eq.s32.totalorder %s2361_s15, 0  ;;  %p252_p2 = scmp.lt.s32.totalorder %s2267_s12, 3 }
   0xf   : > { %s2270_s17 = smov [#allocation8]   ;;  %s2271_s20 = smov [#allocation7]  }
  0x10   : > { %p2366_p3 = pnand %p1771_p0, %p252_p2  ;;  %s296_s18 = sshll.u32 %s2270_s17, 4  ;;  %s2379_s18 = int_to_ptr.vmem [resolvable:$true] %s296_s18 }
  0x11   : > { %s280_s21 = sshll.u32 %s2271_s20, 4  ;;  %s2074_s22 = scalar_lea.vmem %s265_s14, 512  ;;  %s2381_s21 = int_to_ptr.vmem [resolvable:$true] %s280_s21 }
  0x12   : > { %s2689_s16 = scalar_select %p2366_p3, 1, 0 }
  0x13   : > { %p1965_p5 = pneg %p2366_p3  ;;  %p2075_p8 = scmp.ne.s32.totalorder %s265_s14, %s2074_s22 }
  0x14   : > { %p2082_p11 = scmp.lt.s32.totalorder %s265_s14, %s265_s14  ;;  %p2083_p12 = scmp.lt.s32.totalorder %s2074_s22, %s2074_s22 }
  0x15   : > { %p2375_p6 = pnand %p1965_p5, %p2681_p1 }
  0x16   : > { %p2084_p13 = por %p2083_p12, %p2082_p11 }
  0x17   : > { %p2065_p7 = pneg %p2375_p6 }
  0x19   : > { %p2077_p9 = pnand %p2075_p8, %p2065_p7 }
  0x1b   : > { %p2078_p10 = pneg %p2077_p9 }
  0x1d   : > { %p2085_p0 = pnand %p2084_p13, %p2078_p10 }
  0x1f   : > { %2088 = shalt.err (!%p2085_p0)
}
  0x20   : > { %s2272_s23 = smov 128   ;;  %s2273_s24 = smov 8  }
  0x21   : > { %s2691_s1 = sld [smem:[#allocation16_spill]]  ;;  %s2100_s27 = scalar_lea.vmem %s2379_s18, 512 }
  0x22   : > { %p2101_p2 = scmp.ne.s32.totalorder %s2379_s18, %s2100_s27  ;;  %p2108_p9 = scmp.lt.s32.totalorder %s2379_s18, %s2379_s18 }
  0x23   : > { %p2109_p10 = scmp.lt.s32.totalorder %s2100_s27, %s2100_s27 }
  0x24   : > { %p2103_p5 = pnand %p2101_p2, %p2065_p7 }
  0x25   : > { %p2110_p11 = por %p2109_p10, %p2108_p9 }
  0x26   : > { %p2104_p8 = pneg %p2103_p5 }
  0x27   : > { %1968 = dma.hbm_to_vmem [thread:$0]  (!%p2375_p6), %s2691_s1, 512, %s265_s14, [#allocation6], %s2272_s23, %s2272_s23, %s2273_s24  }
  0x28   : > { %p2111_p12 = pnand %p2110_p11, %p2104_p8 }
  0x2a   : > { %2114 = shalt.err (!%p2111_p12)
}
  0x2b   : > { %s2692_s5 = sld [smem:[#allocation18_spill]]  ;;  %s2126_s13 = scalar_lea.vmem %s2381_s21, 512 }
  0x2c   : > { %p2127_p13 = scmp.ne.s32.totalorder %s2381_s21, %s2126_s13  ;;  %p2134_p5 = scmp.lt.s32.totalorder %s2381_s21, %s2381_s21 }
  0x2d   : > { %p2135_p8 = scmp.lt.s32.totalorder %s2126_s13, %s2126_s13 }
  0x2e   : > { %p2129_p0 = pnand %p2127_p13, %p2065_p7 }
  0x2f   : > { %p2136_p9 = por %p2135_p8, %p2134_p5 }
  0x30   : > { %p2130_p2 = pneg %p2129_p0 }
  0x31   : > { %1974 = dma.hbm_to_vmem [thread:$0]  (!%p2375_p6), %s2692_s5, 512, %s2379_s18, [#allocation9], %s2272_s23, %s2272_s23, %s2273_s24  }
  0x32   : > { %p2137_p10 = pnand %p2136_p9, %p2130_p2 }
  0x34   : > { %2140 = shalt.err (!%p2137_p10)
}
  0x35   : > { %s2693_s3 = sld [smem:[#allocation17_spill]]  ;;  %s2274_s18 = smov [#allocation10]  }
  0x36   : > { %s312_s20 = sshll.u32 %s2274_s18, 4  ;;  %s313_s20 = int_to_ptr.vmem [resolvable:$true] %s312_s20 }
  0x37   : > { %s2152_s22 = scalar_lea.vmem %s313_s20, 512  ;;  %p2160_p0 = scmp.lt.s32.totalorder %s313_s20, %s313_s20 }
  0x38   : > { %p2153_p11 = scmp.ne.s32.totalorder %s313_s20, %s2152_s22  ;;  %p2161_p2 = scmp.lt.s32.totalorder %s2152_s22, %s2152_s22 }
  0x3a   : > { %p2155_p12 = pnand %p2153_p11, %p2065_p7  ;;  %p2162_p5 = por %p2161_p2, %p2160_p0 }
  0x3b   : > { %1971 = dma.hbm_to_vmem [thread:$0]  (!%p2375_p6), %s2693_s3, 512, %s2381_s21, [#allocation6], %s2272_s23, %s2272_s23, %s2273_s24  }
  0x3c   : > { %p2156_p13 = pneg %p2155_p12 }
  0x3e   : > { %p2163_p8 = pnand %p2162_p5, %p2156_p13 }
  0x40   : > { %2166 = shalt.err (!%p2163_p8)
}
  0x41   : > { %s2694_s7 = sld [smem:[#allocation19_spill]]  ;;  %s1770_s19 = sadd.s32 4294967294, %s2267_s12  }
  0x42   : > { %s2441_s26 = sadd.s32 1, %s2267_s12   ;;  %s34_s28 = sadd.s32 1, %s2263_s11 }
  0x43   : > { %s31_s27 = ssub.s32 %s2267_s12, %s2441_s26  ;;  %p41_p9 = scmp.ne.s32.totalorder %s2263_s11, %s2259_s10 }
  0x44   : > { %p32_p7 = scmp.eq.s32.totalorder %s31_s27, 0  ;;  %p42_p10 = scmp.eq.s32.totalorder %s2267_s12, 0 }
  0x45   : > { %p47_p11 = scmp.ne.s32.totalorder %s2259_s10, %s2255_s30  ;;  %p239_p13 = scmp.eq.s32.totalorder %s2361_s15, 1 }
  0x46   : > { %s2452_s29 = scalar_select %p32_p7, %s2263_s11, %s34_s28  }
  0x47   : > { %1977 = dma.hbm_to_vmem [thread:$0]  (!%p2375_p6), %s2694_s7, 512, %s313_s20, [#allocation9], %s2272_s23, %s2272_s23, %s2273_s24  }
  0x48   : > { %p2454_p12 = por %p42_p10, %p41_p9  ;;  %p2460_p6 = por %p2681_p1, %p47_p11 }
  0x49   : > { %p245_p0 = scmp.eq.s32.totalorder %s1770_s19, 1  ;;  %p1990_p2 = scmp.lt.s32.totalorder %s2267_s12, 2 }
  0x4a   : > { %s2696_s23 = scalar_select %p2460_p6, 1, 0 }
  0x4b   : > { %s329_s24 = sand.u32 1, %s2263_s11   ;;  %p2467_p5 = por %p239_p13, %p41_p9 }
  0x4c   : > { %p2471_p8 = por %p245_p0, %p47_p11  ;;  %s1777_s18 = sshll.u32 %s329_s24, 3 }
  0x4d   : > { %s2697_s14 = scalar_select %p2467_p5, 1, 0 }
  0x4e   : > { %s2698_s17 = scalar_select %p2471_p8, 1, 0 }
  0x4f   : > { %s1778_s20 = sshll.u32 %s2267_s12, 7  ;;  %s333_s19 = scalar_lea.vmem [#allocation2], %s1777_s18 }
  0x50   : > { %s2479_s25 = scalar_lea.hbm %s2671_s0, %s1778_s20  ;;  %s340_s27 = sshll.u32 %s333_s19, 4  ;;  %s341_s27 = int_to_ptr.vmem [resolvable:$true] %s340_s27 }
  0x51   : > { %p2483_p7 = pnand %p1990_p2, %p2454_p12  ;;  %s330_s1 = scalar_lea.sflag [#allocation3], %s329_s24 }
  0x52   : > { %s2167_s3 = scalar_lea.hbm %s2479_s25, 128  ;;  %s2172_s21 = scalar_lea.hbm %s2671_s0, 256 }
  0x53   : > { %p2168_p9 = scmp.ne.s32.totalorder %s2479_s25, %s2167_s3  ;;  %p2169_p10 = pneg %p2483_p7 }
  0x54   : > { %p2173_p0 = scmp.lt.s32.totalorder %s2479_s25, %s2671_s0  ;;  %p2174_p12 = scmp.lt.s32.totalorder %s2172_s21, %s2167_s3 }
  0x55   : > { %p2170_p11 = pnand %p2169_p10, %p2168_p9 }
  0x56   : > { %p2175_p2 = por %p2174_p12, %p2173_p0 }
  0x57   : > { %p2171_p13 = pneg %p2170_p11 }
  0x59   : > { %p2176_p4 = pnand %p2175_p2, %p2171_p13 }
  0x5b   : > { %2179 = shalt.err (!%p2176_p4)
}
  0x5c   : > { %s2180_s13 = scalar_lea.vmem %s341_s27, 128  ;;  %s2275_s24 = smov [#allocation2]  }
  0x5d   : > { %p2181_p1 = scmp.ne.s32.totalorder %s341_s27, %s2180_s13  ;;  %s2185_s5 = sshll.u32 %s2275_s24, 4  ;;  %s2186_s5 = int_to_ptr.vmem [resolvable:$false] %s2185_s5 }
  0x5e   : > { %s2187_s7 = scalar_lea.vmem %s2186_s5, 256  ;;  %p2188_p9 = scmp.lt.s32.totalorder %s341_s27, %s2186_s5 }
  0x5f   : > { %p2183_p8 = pnand %p2181_p1, %p2169_p10  ;;  %p2189_p11 = scmp.lt.s32.totalorder %s2187_s7, %s2180_s13 }
  0x61   : > { %p2184_p5 = pneg %p2183_p8  ;;  %p2190_p6 = por %p2189_p11, %p2188_p9 }
  0x63   : > { %p2191_p3 = pnand %p2190_p6, %p2184_p5 }
  0x65   : > { %2194 = shalt.err (!%p2191_p3)
}
  0x66   : > { %1981 = dma.hbm_to_vmem [thread:$0]  (!%p2483_p7), %s2479_s25, 128, %s341_s27, %s330_s1  }
  0x67   : > { %p2700_p13 = scmp.ne.s32.totalorder %s2689_s16, 0 }
  0x68   : > { %s2504_s3 = sand.u32 (!%p2700_p13), 1, %s2259_s10   ;;  %p2701_p1 = scmp.ne.s32.totalorder (!%p2700_p13), %s2696_s23, 0 }
  0x69   : > { %349 = sbr.rel (%p2700_p13) target bundleno = 1757 (0x6dd), region = 56  ;;  %s1780_s20 = sshll.u32 (!%p2700_p13), %s2504_s3, 3 }
  0x6a   : > { %s352_s5 = scalar_lea.sflag (!%p2700_p13), [#allocation3], %s2504_s3  ;;  %s355_s7 = scalar_lea.vmem (!%p2700_p13), [#allocation2], %s1780_s20 }
  0x6e   : > { %2238 = dma.done.wait (%p2701_p1), %s352_s5, 128  }
  0x6f   : > { %2240 = vsyncadd (%p2701_p1), %s352_s5, 4294967168  ;;  %p2702_p3 = scmp.eq.s32.totalorder %s2361_s15, 0 }
  0x71   : > { %2242 = dma.done.wait (%p2702_p3), [#allocation6], 1024   ;;  %p2703_p4 = pmov %p2702_p3 }
  0x72   : > { %p2704_p6 = pmov %p2702_p3 }
  0x73   : > { %2244 = vsyncadd (%p2703_p4), [#allocation6], 4294966272 }
  0x74   : > { %2246 = dma.done.wait (%p2704_p6), [#allocation9], 1024   ;;  %p2705_p5 = pmov %p2702_p3 }
  0x75   : > { %v2276_v0 = vmov 0.0   ;;  %vm2277_vm0 = vmmov 0   ;;  %v410_v1 = vld [vmem:[#allocation5 + $0x18] sm:$0xff]  ;;  %v409_v2 = vld [vmem:[#allocation5 + $0x10] sm:$0xff]  ;;  %v408_v3 = vld [vmem:[#allocation5 + $0x8] sm:$0xff]  ;;  %vm418_vm1 = vcmask 261120  }
  0x76   : > { %2248 = vsyncadd (%p2705_p5), [#allocation9], 4294966272  ;;  %1852 = vmatprep.subr.mxu0 %v2276_v0  ;;  %1860 = vmatprep.mubr.msk.f32.mxu0 %vm2277_vm0, %v2276_v0  ;;  %v407_v4 = vld [vmem:[#allocation5] sm:$0xff]  ;;  %v406_v5 = vld [vmem:[%s355_s7] sm:$0xff]  ;;  %s2278_s23 = smov 120   ;;  %s2279_s25 = smov 96  }
  0x77   : > { %1863 = vmatprep.subr.mxu1 %v2276_v0  ;;  %1865 = vmatprep.mubr.msk.f32.mxu1 %vm2277_vm0, %v2276_v0  ;;  %v1786_v6 = vld [vmem:[%s2673_s2] ss:$0 sm:$0xff]  ;;  %s2280_s27 = smov 80   ;;  %s2281_s28 = smov 88   ;;  %vm526_vm2 = vcmask 64512  }
  0x78   : > { %1853 = vmatpush3.msra.mxu0 %v410_v1  ;;  %s2282_s22 = smov 72   ;;  %s2283_s21 = smov 112  }
  0x79   : > { %1854 = vmatprep.subr.mxu0 %v2276_v0  ;;  %s2284_s18 = smov 104   ;;  %s2285_s19 = smov 56  }
  0x7a   : > { %1855 = vmatpush3.msra.mxu0 %v409_v2  ;;  %s2286_s13 = smov 64   ;;  %s2287_s24 = smov 48  }
  0x7b   : > { %1856 = vmatprep.subr.mxu0 %v2276_v0  ;;  %s2288_s5 = smov 40   ;;  %p2706_p7 = scmp.ne.s32.totalorder %s2697_s14, 0 }
  0x7c   : > { %1857 = vmatpush3.msra.mxu0 %v408_v3 }
  0x7d   : > { %1858 = vmatprep.subr.mxu0 %v2276_v0 }
  0x7e   : > { %1859 = vmatpush3.msra.mxu0 %v407_v4 }
  0x7f   : > { %1861 = vmatmul.mubr.msk.f32.vlgmr.msra.gmra.mxu0 %vm418_vm1, %v406_v5  ;;  %1873 = vmatprep.subr.mxu0 %v2276_v0 }
  0x80   : > { %1875 = vmatprep.mubr.msk.f32.mxu0 %vm2277_vm0, %v2276_v0 }
 0x13f   : > { %v488_v7 = vpop.f32.mrf.mxu0 }
 0x140   : > { %v2538_v8 = vadd.f32 %v1786_v6, %v488_v7  ;;  %v1163_v6 = vld [vmem:[#allocation7] sm:$0xff]  ;;  %v1164_v7 = vld [vmem:[#allocation7 + $0x8] sm:$0xff] }
 0x141   : > { %v1862_v9 = vpop.f32.mrf.mxu0 }
 0x142   : > { %493 = vrot.lane.b32.xlu1 %v2538_v8, %s2278_s23  ;;  %502 = vrot.lane.b32.xlu0 %v2538_v8, %s2279_s25  ;;  %v522_v12 = vmul.f32 0.35355338, %v2538_v8 }
 0x146   : > { %506 = vrot.lane.b32.xlu1 %v2538_v8, %s2280_s27  ;;  %504 = vrot.lane.b32.xlu0 %v2538_v8, %s2281_s28  ;;  %s1810_s28 = sshll.u32 %s2361_s15, 7  ;;  %s2289_s15 = smov [#allocation11]  }
 0x147   : > { %s2199_s7 = sshll.u32 %s2289_s15, 4  ;;  %s2200_s7 = int_to_ptr.vmem [resolvable:$false] %s2199_s7 }
 0x14a   : > { %508 = vrot.lane.b32.xlu1 %v2538_v8, %s2282_s22  ;;  %496 = vrot.lane.b32.xlu0 %v2538_v8, %s2283_s21  ;;  %s405_s22 = scalar_lea.vmem [#allocation11], %s1780_s20  ;;  %s2201_s20 = scalar_lea.vmem %s2200_s7, 256 }
 0x14b   : > { %s1662_s21 = sshll.u32 %s405_s22, 4  ;;  %s1663_s21 = int_to_ptr.vmem [resolvable:$true] %s1662_s21 }
 0x14c   : > { %p2202_p12 = scmp.lt.s32.totalorder %s1663_s21, %s2200_s7 }
 0x14e   : > { %499 = vrot.lane.b32.xlu0 %v2538_v8, %s2284_s18 }
 0x1b4   : > { %v494_v10 = vpop.permute.xlu1 %493  ;;  %v503_v11 = vpop.permute.xlu0 %502 }
 0x1b5   : > { %1864 = vmatpush3.xpose.msk.msra.mxu1 %vm526_vm2, %v503_v11  ;;  %v523_v15 = vmul.f32 0.35355338, %v494_v10  ;;  %v1166_v11 = vld [vmem:[#allocation7 + $0x18] sm:$0xff] }
 0x1b6   : > { %1868 = vmatprep.subr.mxu1 %v2276_v0 }
 0x1b8   : > { %v507_v13 = vpop.permute.xlu1 %506  ;;  %v505_v14 = vpop.permute.xlu0 %504  ;;  %1866 = vmatmul.mubr.msk.f32.vlgmr.msra.gmra.mxu1 %vm526_vm2, %v522_v12 }
 0x1b9   : > { %1869 = vmatpush3.xpose.msk.msra.mxu1 %vm526_vm2, %v505_v14  ;;  %1874 = vmatpush3.xpose.msk.msra.mxu0 %vm526_vm2, %v507_v13 }
 0x1ba   : > { %1870 = vmatprep.mubr.msk.f32.mxu1 %vm2277_vm0, %v2276_v0  ;;  %1878 = vmatprep.subr.mxu1 %v2276_v0 }
 0x1bb   : > { %1883 = vmatprep.subr.mxu0 %v2276_v0 }
 0x1bc   : > { %v509_v16 = vpop.permute.xlu1 %508  ;;  %v497_v17 = vpop.permute.xlu0 %496  ;;  %1871 = vmatmul.mubr.msk.f32.vlgmr.msra.gmra.mxu1 %vm526_vm2, %v523_v15 }
 0x1bd   : > { %v524_v18 = vmul.f32 0.35355338, %v497_v17  ;;  %1879 = vmatpush3.xpose.msk.msra.mxu1 %vm526_vm2, %v509_v16  ;;  %1880 = vmatprep.mubr.msk.f32.mxu1 %vm2277_vm0, %v2276_v0 }
 0x1be   : > { %1888 = vmatprep.subr.mxu1 %v2276_v0 }
 0x1bf   : > { %1876 = vmatmul.mubr.msk.f32.vlgmr.msra.gmra.mxu0 %vm526_vm2, %v524_v18  ;;  %v1478_v18 = vld [vmem:[#allocation8 + $0x18] sm:$0xff] }
 0x1c0   : > { %v500_v19 = vpop.permute.xlu0 %499  ;;  %1885 = vmatprep.mubr.msk.f32.mxu0 %vm2277_vm0, %v2276_v0 }
 0x1c1   : > { %v525_v20 = vmul.f32 0.35355338, %v500_v19  ;;  %v1477_v19 = vld [vmem:[#allocation8 + $0x10] sm:$0xff] }
 0x1c3   : > { %1881 = vmatmul.mubr.msk.f32.vlgmr.msra.gmra.mxu1 %vm526_vm2, %v525_v20  ;;  %v1476_v20 = vld [vmem:[#allocation8 + $0x8] sm:$0xff] }
 0x1c4   : > { %1890 = vmatprep.mubr.msk.f32.mxu1 %vm2277_vm0, %v2276_v0 }
 0x278   : > { %v598_v21 = vpop.f32.mrf.mxu1 }
 0x279   : > { %v827_v22 = vsel %vm526_vm2, %v598_v21, -inf }
 0x27a   : > { %828 = vmax.xlane.f32.xlu1 %v827_v22  ;;  %v1867_v23 = vpop.f32.mrf.mxu1  ;;  %v1565_v22 = vld [vmem:[#allocation10 + $0x18] sm:$0xff] }
 0x27c   : > { %v673_v24 = vpop.f32.mrf.mxu1 }
 0x27d   : > { %v830_v25 = vsel %vm526_vm2, %v673_v24, -inf }
 0x27e   : > { %831 = vmax.xlane.f32.xlu0 %v830_v25  ;;  %v1872_v26 = vpop.f32.mrf.mxu1 }
 0x27f   : > { %v748_v27 = vpop.f32.mrf.mxu0 }
 0x280   : > { %v833_v28 = vsel %vm526_vm2, %v748_v27, -inf }
 0x281   : > { %v1877_v29 = vpop.f32.mrf.mxu0 }
 0x282   : > { %834 = vmax.xlane.f32.xlu0 %v833_v28 }
 0x283   : > { %v823_v30 = vpop.f32.mrf.mxu1 }
 0x284   : > { %v836_v31 = vsel %vm526_vm2, %v823_v30, -inf }
 0x285   : > { %837 = vmax.xlane.f32.xlu1 %v836_v31  ;;  %v1882_v32 = vpop.f32.mrf.mxu1 }
 0x296   : > { %513 = vrot.lane.b32.xlu1 %v2538_v8, %s2285_s19 }
 0x298   : > { %510 = vrot.lane.b32.xlu0 %v2538_v8, %s2286_s13  ;;  %s1660_s13 = scalar_lea.hbm %s2680_s9, %s1810_s28 }
 0x303   : > { %v829_v33 = vpop.xlane.xlu1 %828 }
 0x304   : > { %v839_v34 = vsub.f32 %v598_v21, %v829_v33  ;;  %v1475_v21 = vld [vmem:[#allocation8] sm:$0xff] }
 0x306   : > { %v843_v35 = vmul.f32 1.442695, %v839_v34 }
 0x307   : > { %v832_v36 = vpop.xlane.xlu0 %831 }
 0x308   : > { %2047 = vpow2.f32 %v843_v35  ;;  %v840_v37 = vsub.f32 %v673_v24, %v832_v36  ;;  %v1804_v36 = vld [vmem:[%s2675_s4] ss:$0 sm:$0xff] }
 0x30a   : > { %v845_v38 = vmul.f32 1.442695, %v840_v37 }
 0x30b   : > { %v835_v39 = vpop.xlane.xlu0 %834 }
 0x30c   : > { %2049 = vpow2.f32 %v845_v38  ;;  %v841_v40 = vsub.f32 %v748_v27, %v835_v39 }
 0x30e   : > { %v847_v41 = vmul.f32 1.442695, %v841_v40  ;;  %v838_v42 = vpop.xlane.xlu1 %837 }
 0x30f   : > { %v842_v43 = vsub.f32 %v823_v30, %v838_v42  ;;  %v511_v44 = vpop.permute.xlu0 %510  ;;  %v1563_v42 = vld [vmem:[#allocation10 + $0x8] sm:$0xff] }
 0x310   : > { %2051 = vpow2.f32 %v847_v41  ;;  %1884 = vmatpush3.msra.mxu0 %v511_v44  ;;  %v1564_v41 = vld [vmem:[#allocation10 + $0x10] sm:$0xff] }
 0x311   : > { %v849_v45 = vmul.f32 1.442695, %v842_v43  ;;  %1893 = vmatprep.subr.mxu0 %v2276_v0  ;;  %v1562_v43 = vld [vmem:[#allocation10] sm:$0xff]  ;;  %v1805_v44 = vld [vmem:[%s2677_s6] ss:$0 sm:$0xff] }
 0x312   : > { %v514_v46 = vpop.permute.xlu1 %513 }
 0x313   : > { %2053 = vpow2.f32 %v849_v45  ;;  %1889 = vmatpush3.msra.mxu1 %v514_v46 }
 0x314   : > { %1898 = vmatprep.subr.mxu1 %v2276_v0 }
 0x315   : > { %v2048_v47 = vpop.eup %2047 }
 0x316   : > { %v851_v48 = vsel %vm526_vm2, %v2048_v47, 0.0 }
 0x317   : > { %852 = vadd.xlane.f32.xlu0 %v851_v48 }
 0x319   : > { %v2050_v49 = vpop.eup %2049 }
 0x31a   : > { %v854_v50 = vsel %vm526_vm2, %v2050_v49, 0.0 }
 0x31b   : > { %855 = vadd.xlane.f32.xlu1 %v854_v50 }
 0x31d   : > { %v2052_v51 = vpop.eup %2051 }
 0x31e   : > { %v857_v52 = vsel %vm526_vm2, %v2052_v51, 0.0 }
 0x31f   : > { %858 = vadd.xlane.f32.xlu0 %v857_v52 }
 0x320   : > { %v2054_v53 = vpop.eup %2053 }
 0x321   : > { %v860_v54 = vsel %vm526_vm2, %v2054_v53, 0.0 }
 0x322   : > { %861 = vadd.xlane.f32.xlu1 %v860_v54 }
 0x333   : > { %516 = vrot.lane.b32.xlu1 %v2538_v8, %s2287_s24  ;;  %s1649_s24 = scalar_lea.sflag [#allocation4], %s2504_s3 }
 0x335   : > { %519 = vrot.lane.b32.xlu0 %v2538_v8, %s2288_s5  ;;  %v1165_v8 = vld [vmem:[#allocation7 + $0x10] sm:$0xff]  ;;  %s2195_s5 = scalar_lea.vmem %s1663_s21, 128 }
 0x336   : > { %p2196_p8 = scmp.ne.s32.totalorder %s1663_s21, %s2195_s5  ;;  %p2203_p2 = scmp.lt.s32.totalorder %s2201_s20, %s2195_s5 }
 0x338   : > { %p2197_p10 = pnand %p2196_p8, %p2706_p7  ;;  %p2204_p9 = por %p2203_p2, %p2202_p12 }
 0x33a   : > { %p2198_p0 = pneg %p2197_p10 }
 0x33c   : > { %p2205_p11 = pnand %p2204_p9, %p2198_p0 }
 0x3a0   : > { %v853_v55 = vpop.xlane.xlu0 %852 }
 0x3a1   : > { %2055 = vrcp.f32 %v853_v55 }
 0x3a4   : > { %v856_v56 = vpop.xlane.xlu1 %855 }
 0x3a5   : > { %2057 = vrcp.f32 %v856_v56 }
 0x3a8   : > { %v859_v57 = vpop.xlane.xlu0 %858 }
 0x3a9   : > { %2059 = vrcp.f32 %v859_v57 }
 0x3ab   : > { %v862_v58 = vpop.xlane.xlu1 %861 }
 0x3ac   : > { %2061 = vrcp.f32 %v862_v58  ;;  %v520_v1 = vpop.permute.xlu0 %519 }
 0x3ae   : > { %v2056_v59 = vpop.eup %2055 }
 0x3af   : > { %v517_v60 = vpop.permute.xlu1 %516  ;;  %v864_v61 = vmul.f32 %v2056_v59, %v2048_v47 }
 0x3b1   : > { %1886 = vmatmul.mubr.msk.f32.vlgmr.msra.gmra.mxu0 %vm526_vm2, %v864_v61 }
 0x3b2   : > { %v2058_v62 = vpop.eup %2057  ;;  %1894 = vmatpush3.msra.mxu0 %v517_v60  ;;  %1895 = vmatprep.mubr.msk.f32.mxu0 %vm2277_vm0, %v2276_v0 }
 0x3b3   : > { %v866_v63 = vmul.f32 %v2058_v62, %v2050_v49  ;;  %1903 = vmatprep.subr.mxu0 %v2276_v0 }
 0x3b5   : > { %1891 = vmatmul.mubr.msk.f32.vlgmr.msra.gmra.mxu1 %vm526_vm2, %v866_v63 }
 0x3b6   : > { %v2060_v2 = vpop.eup %2059  ;;  %1899 = vmatpush3.msra.mxu1 %v520_v1  ;;  %1900 = vmatprep.mubr.msk.f32.mxu1 %vm2277_vm0, %v2276_v0 }
 0x3b7   : > { %v868_v3 = vmul.f32 %v2060_v2, %v2052_v51  ;;  %1908 = vmatprep.subr.mxu1 %v2276_v0 }
 0x3b9   : > { %v2062_v4 = vpop.eup %2061  ;;  %1896 = vmatmul.mubr.msk.f32.vlgmr.msra.gmra.mxu0 %vm526_vm2, %v868_v3 }
 0x3ba   : > { %v870_v5 = vmul.f32 %v2062_v4, %v2054_v53  ;;  %1905 = vmatprep.mubr.msk.f32.mxu0 %vm2277_vm0, %v2276_v0  ;;  %1904 = vmatpush3.msra.mxu0 %v1163_v6 }
 0x3bb   : > { %1913 = vmatprep.subr.mxu0 %v2276_v0 }
 0x3bc   : > { %1901 = vmatmul.mubr.msk.f32.vlgmr.msra.gmra.mxu1 %vm526_vm2, %v870_v5 }
 0x3bd   : > { %1910 = vmatprep.mubr.msk.f32.mxu1 %vm2277_vm0, %v2276_v0  ;;  %1909 = vmatpush3.msra.mxu1 %v1164_v7 }
 0x3be   : > { %1918 = vmatprep.subr.mxu1 %v2276_v0 }
 0x471   : > { %v940_v9 = vpop.f32.mrf.mxu0 }
 0x472   : > { %1906 = vmatmul.mubr.msk.f32.vlgmr.msra.gmra.mxu0 %vm526_vm2, %v940_v9 }
 0x473   : > { %v1887_v10 = vpop.f32.mrf.mxu0  ;;  %1914 = vmatpush3.msra.mxu0 %v1165_v8  ;;  %1915 = vmatprep.mubr.msk.f32.mxu0 %vm2277_vm0, %v2276_v0 }
 0x474   : > { %1923 = vmatprep.subr.mxu0 %v2276_v0 }
 0x475   : > { %v1013_v12 = vpop.f32.mrf.mxu1 }
 0x476   : > { %1911 = vmatmul.mubr.msk.f32.vlgmr.msra.gmra.mxu1 %vm526_vm2, %v1013_v12 }
 0x477   : > { %v1892_v13 = vpop.f32.mrf.mxu1  ;;  %1919 = vmatpush3.msra.mxu1 %v1166_v11  ;;  %1920 = vmatprep.mubr.msk.f32.mxu1 %vm2277_vm0, %v2276_v0 }
 0x478   : > { %1934 = vmatprep.subr.mxu1 %v2276_v0 }
 0x479   : > { %v1086_v14 = vpop.f32.mrf.mxu0 }
 0x47a   : > { %1916 = vmatmul.mubr.msk.f32.vlgmr.msra.gmra.mxu0 %vm526_vm2, %v1086_v14 }
 0x47b   : > { %v1897_v15 = vpop.f32.mrf.mxu0  ;;  %1931 = vmatprep.mubr.msk.f32.mxu0 %vm2277_vm0, %v2276_v0  ;;  %1924 = vmatpush3.msra.mxu0 %v1478_v18 }
 0x47c   : > { %v1159_v16 = vpop.f32.mrf.mxu1  ;;  %1925 = vmatprep.subr.mxu0 %v2276_v0 }
 0x47d   : > { %1921 = vmatmul.mubr.msk.f32.vlgmr.msra.gmra.mxu1 %vm526_vm2, %v1159_v16  ;;  %1926 = vmatpush3.msra.mxu0 %v1477_v19 }
 0x47e   : > { %v1902_v17 = vpop.f32.mrf.mxu1  ;;  %1942 = vmatprep.mubr.msk.f32.mxu1 %vm2277_vm0, %v2276_v0  ;;  %1927 = vmatprep.subr.mxu0 %v2276_v0 }
 0x47f   : > { %1928 = vmatpush3.msra.mxu0 %v1476_v20  ;;  %1935 = vmatpush3.msra.mxu1 %v1565_v22 }
 0x480   : > { %1929 = vmatprep.subr.mxu0 %v2276_v0  ;;  %1936 = vmatprep.subr.mxu1 %v2276_v0 }
 0x481   : > { %1930 = vmatpush3.msra.mxu0 %v1475_v21  ;;  %1937 = vmatpush3.msra.mxu1 %v1564_v41 }
 0x482   : > { %1938 = vmatprep.subr.mxu1 %v2276_v0 }
 0x483   : > { %1939 = vmatpush3.msra.mxu1 %v1563_v42 }
 0x484   : > { %1940 = vmatprep.subr.mxu1 %v2276_v0  ;;  %v1807_v0 = vld [vmem:[%s2679_s8] ss:$0 sm:$0xff] }
 0x485   : > { %1941 = vmatpush3.msra.mxu1 %v1562_v43 }
 0x532   : > { %v1236_v23 = vpop.f32.mrf.mxu0 }
 0x533   : > { %v1459_v28 = vsel %vm418_vm1, %v1236_v23, 0.0 }
 0x534   : > { %v1907_v24 = vpop.f32.mrf.mxu0 }
 0x536   : > { %v1309_v25 = vpop.f32.mrf.mxu1 }
 0x537   : > { %v1460_v26 = vsel %vm418_vm1, %v1309_v25, 0.0 }
 0x538   : > { %v1912_v27 = vpop.f32.mrf.mxu1  ;;  %v1461_v29 = vadd.f32 %v1460_v26, %v1459_v28 }
 0x53a   : > { %v1382_v30 = vpop.f32.mrf.mxu0 }
 0x53b   : > { %v1462_v31 = vsel %vm418_vm1, %v1382_v30, 0.0 }
 0x53c   : > { %v1463_v32 = vadd.f32 %v1462_v31, %v1461_v29  ;;  %v1917_v33 = vpop.f32.mrf.mxu0 }
 0x53d   : > { %v1455_v34 = vpop.f32.mrf.mxu1 }
 0x53e   : > { %v1464_v35 = vsel %vm418_vm1, %v1455_v34, 0.0 }
 0x53f   : > { %v1465_v37 = vadd.f32 %v1464_v35, %v1463_v32  ;;  %v1922_v38 = vpop.f32.mrf.mxu1 }
 0x541   : > { %v1473_v39 = vadd.f32 %v1804_v36, %v1465_v37 }
 0x543   : > { %v1474_v40 = vadd.f32 %v1473_v39, %v1473_v39 }
 0x545   : > { %1932 = vmatmul.mubr.msk.f32.vlgmr.msra.gmra.mxu0 %vm418_vm1, %v1474_v40 }
 0x605   : > { %v1555_v45 = vpop.f32.mrf.mxu0 }
 0x606   : > { %v1556_v46 = vadd.f32 %v1805_v44, %v1555_v45 }
 0x607   : > { %v1933_v47 = vpop.f32.mrf.mxu0 }
 0x608   : > { %vm1559_vm3 = vcmp.ge.f32.partialorder %v1556_v46, 0.0  ;;  %v1560_v48 = vmul.f32 0.01, %v1556_v46 }
 0x60a   : > { %v1561_v49 = vsel %vm1559_vm3, %v1556_v46, %v1560_v48 }
 0x60b   : > { %1943 = vmatmul.mubr.msk.f32.vlgmr.msra.gmra.mxu1 %vm418_vm1, %v1561_v49 }
 0x6cb   : > { %v1642_v50 = vpop.f32.mrf.mxu1 }
 0x6cc   : > { %v1643_v51 = vadd.f32 %v1807_v0, %v1642_v50 }
 0x6cd   : > { %v1944_v52 = vpop.f32.mrf.mxu1 }
 0x6ce   : > { %v1646_v53 = vadd.f32 %v1643_v51, %v1474_v40 }
 0x6d0   : > { %1647 = vst.msk [vmem:[%s405_s22] sm:$0xff] %vm418_vm1, %v1646_v53 }
 0x6d1   : > { %2208 = shalt.err (!%p2205_p11)
}
 0x6d2   : > { %s2209_s1 = scalar_lea.hbm %s1660_s13, 128  ;;  %s2213_s23 = scalar_lea.hbm %s2680_s9, 256 }
 0x6d3   : > { %p2210_p13 = scmp.ne.s32.totalorder %s1660_s13, %s2209_s1  ;;  %p2214_p4 = scmp.lt.s32.totalorder %s1660_s13, %s2680_s9 }
 0x6d4   : > { %p2215_p6 = scmp.lt.s32.totalorder %s2213_s23, %s2209_s1 }
 0x6d5   : > { %p2211_p1 = pnand %p2210_p13, %p2706_p7 }
 0x6d6   : > { %p2216_p5 = por %p2215_p6, %p2214_p4 }
 0x6d7   : > { %p2212_p3 = pneg %p2211_p1 }
 0x6d9   : > { %p2217_p8 = pnand %p2216_p5, %p2212_p3 }
 0x6db   : > { %2220 = shalt.err (!%p2217_p8)
}
 0x6dc   : > { %1963 = dma.vmem_to_hbm [thread:$0]  (%p2706_p7), %s1663_s21, 128, %s1660_s13, %s1649_s24  }
 0x6dd PF: > { %s1674_s28 = sand.u32 1, %s2255_s30   ;;  %p2707_p10 = scmp.ne.s32.totalorder %s2698_s17, 0 }
 0x6de   : > { %p2708_p0 = scmp.ge.s32.totalorder %s2267_s12, 2  ;;  %s1675_s22 = scalar_lea.sflag [#allocation4], %s1674_s28 }
 0x6e0   : > { %p1983_p12 = pnand %p2708_p0, %p2707_p10 }
 0x6e2   : > { %p1984_p2 = pneg %p1983_p12 }
 0x6e4   : > { %2250 = dma.done.wait (%p1984_p2), %s1675_s22, 128  }
 0x6e5   : > { %2252 = vsyncadd (%p1984_p2), %s1675_s22, 4294967168  ;;  %p24_p9 = scmp.ge.s32.totalorder %s2441_s26, 4   ;;  %s2709_s30 = smov %s2259_s10 }
 0x6e6   : > { %s2710_s10 = smov %s2263_s11  ;;  %s2711_s11 = smov %s2452_s29 }
 0x6e7   : > { %s2712_s12 = smov %s2441_s26  ;;  %26 = sbr.rel (!%p24_p9) target bundleno = 12 (0xc), region = 117 }
 0x6ec   :  { %1680 = vsyncpa [#allocation3], 1 }
 0x6ed   :  { %1682 = vsyncpa [#allocation3 + $0x1], 1 }
 0x6ee   :  { %1683 = vsyncpa [#allocation6], 1 }
 0x6ef   :  { %1684 = vsyncpa [#allocation9], 1 }
 0x6f0   :  { %1685 = vsyncpa [#allocation4], 1 }
 0x6f1   :  { %1687 = vsyncpa [#allocation4 + $0x1], 1 }

</bundles_post_ra>
